<compile_context>
chip_gen: v7x
topology: tpu7x:2x2x1
jax: 0.10.0
libtpu: 0.0.40
codegen_flags: <defaults>
</compile_context>

<pallas_src>
import functools

import jax
import jax.numpy as jnp
from jax.experimental import pallas as pl
from jax.experimental.pallas import tpu as pltpu

N, C, L = 2, 8, 128          # batch, channels, length (PyTorch NCL layout)
NUM_OPS = 5
EPS = 1e-5


def branch_kernel(wbn_ref, x_ref, cw_ref, o_ref):
    """A block of Bt Branch instances per grid step, native (N, C, L) layout.

    wbn_ref: (2*B,)            f32 SMEM -- [w_max_pool, w_avg_pool] per instance (flat)
    x_ref  : (Bt, N, C, L)     f32 VMEM -- activations, L=128 lane-dense
    cw_ref : (Bt, C, 3C)       f32 VMEM -- [w_conv*k0 | w_conv*k1 + w_skip*I | w_conv*k2]
    o_ref  : (Bt, N, C, L)     f32 VMEM
    """
    bt, n_slab, c, l = x_ref.shape
    blk = pl.program_id(0)
    inv_count = 1.0 / float(n_slab * l)

    # Grid-step-invariant boundary masks — hoisted out of the instance loop.
    lane = jax.lax.broadcasted_iota(jnp.int32, (c, l), 1)
    first = lane == 0
    last = lane == (l - 1)

    for j in range(bt):                          # static, unrolled instance loop
        idx = blk * bt + j                       # global instance index
        w_max = wbn_ref[2 * idx]
        w_avg = wbn_ref[2 * idx + 1]
        w_cat = cw_ref[j]                        # (C, 3C)

        maxs, avgs, convs = [], [], []
        s_max = jnp.zeros((c, 1), jnp.float32)
        ss_max = jnp.zeros((c, 1), jnp.float32)
        s_avg = jnp.zeros((c, 1), jnp.float32)
        ss_avg = jnp.zeros((c, 1), jnp.float32)

        for n in range(n_slab):                  # static slab loop; BN stats span all slabs
            x = x_ref[j, n]                      # (C, L) — one vreg per channel row group

            # Shifted views via XLU rolls (non-negative shifts) + lane masks.
            x_m1 = pltpu.roll(x, shift=1, axis=1)        # x[l-1] at lane l (wrapped)
            x_p1 = pltpu.roll(x, shift=l - 1, axis=1)    # x[l+1] at lane l (wrapped)
            x_prev0 = jnp.where(first, 0.0, x_m1)        # zero-padded x[l-1]
            x_next0 = jnp.where(last, 0.0, x_p1)         # zero-padded x[l+1]

            # Pooling primitives (window always contains the center element).
            maxp = jnp.maximum(x, jnp.maximum(jnp.where(first, x, x_m1),
                                              jnp.where(last, x, x_p1)))
            avgp = (x_prev0 + x + x_next0) * (1.0 / 3.0)  # count_include_pad=True

            # conv_3 + skip_connect in one MXU matmul: (C,3C) @ (3C,L).
            # NOTE: the sublane concat is 8-sublane aligned; replacing it with
            # three accumulated dots is a profile-gated micro-opt (not needed).
            x_cat = jnp.concatenate([x_prev0, x, x_next0], axis=0)      # (3C, L)
            conv = jnp.dot(w_cat, x_cat,
                           preferred_element_type=jnp.float32,
                           precision=jax.lax.Precision.HIGHEST)

            s_max = s_max + jnp.sum(maxp, axis=1, keepdims=True)
            ss_max = ss_max + jnp.sum(maxp * maxp, axis=1, keepdims=True)
            s_avg = s_avg + jnp.sum(avgp, axis=1, keepdims=True)
            ss_avg = ss_avg + jnp.sum(avgp * avgp, axis=1, keepdims=True)
            maxs.append(maxp)
            avgs.append(avgp)
            convs.append(conv)

        # BatchNorm1d(affine=False), training-mode stats over (N, L), fused to
        # per-channel scale/bias; the branch weight is folded into the scale.
        def scale_bias(s, ss, w):
            m = s * inv_count
            var = jnp.maximum(ss * inv_count - m * m, 0.0)   # clamp for stability
            sc = w * jax.lax.rsqrt(var + EPS)                # EUP rsqrt
            return sc, -m * sc

        sc_max, b_max = scale_bias(s_max, ss_max, w_max)
        sc_avg, b_avg = scale_bias(s_avg, ss_avg, w_avg)

        for n in range(n_slab):
            # weights[0] ('none' branch) multiplies zeros -> contributes nothing.
            o_ref[j, n] = (convs[n]
                           + maxs[n] * sc_max + b_max
                           + avgs[n] * sc_avg + b_avg)


def _pick_block_b(batch):
    """Largest instance-block size (<=32) dividing B that still leaves >=2 grid
    steps (so both v7x TensorCores get work); otherwise the whole batch."""
    for bt in (32, 16, 8, 4, 2, 1):
        if bt <= batch and batch % bt == 0 and batch // bt >= 2:
            return bt
    return batch


@jax.jit
def branch_forward_batched(weights, x, conv_w):
    """weights: (B, NUM_OPS), x: (B, N, C, L), conv_w: (B, 3, C, C) [k, out, in]."""
    B, n_slab, c, l = x.shape
    bt = _pick_block_b(B)

    w_skip = weights[:, 1][:, None, None]
    w_conv = weights[:, 4][:, None, None]
    eye = jnp.eye(c, dtype=jnp.float32)
    # Fold skip-connect and the conv branch weight into the conv taps (tiny CxC
    # pre-scale in the wrapper; the MXU output then already carries both).
    cw_folded = jnp.concatenate(
        [w_conv * conv_w[:, 0],
         w_conv * conv_w[:, 1] + w_skip * eye,
         w_conv * conv_w[:, 2]], axis=2)                     # (B, C, 3C)

    # Flat 1-D SMEM layout for the per-instance BN branch weights.
    wbn_flat = weights[:, 2:4].reshape(-1)                   # (2B,)

    # NOTE: on v7x, pltpu.CORE_PARALLEL on this axis would shard the instance
    # blocks across the two TensorCores; "parallel" is kept for portability.
    return pl.pallas_call(
        branch_kernel,
        out_shape=jax.ShapeDtypeStruct((B, n_slab, c, l), jnp.float32),
        grid=(B // bt,),
        in_specs=[
            pl.BlockSpec(memory_space=pltpu.MemorySpace.SMEM),         # BN weights (flat)
            pl.BlockSpec((bt, n_slab, c, l), lambda g: (g, 0, 0, 0)),  # x, native layout
            pl.BlockSpec((bt, c, 3 * c), lambda g: (g, 0, 0)),         # folded conv taps
        ],
        out_specs=pl.BlockSpec((bt, n_slab, c, l), lambda g: (g, 0, 0, 0)),
        compiler_params=pltpu.CompilerParams(
            dimension_semantics=("parallel",)),
    )(wbn_flat, x, cw_folded)


def branch_forward(weights, x, conv_w):
    """Single Branch forward — same semantics as the PyTorch module's forward."""
    return branch_forward_batched(weights[None], x[None], conv_w[None])[0]


def _ref_forward_one(weights, x, conv_w):
    """Pure-JAX reference mirroring the PyTorch forward semantics (1 instance)."""
    hi = jax.lax.Precision.HIGHEST
    l = x.shape[-1]
    pad0 = jnp.pad(x, ((0, 0), (0, 0), (1, 1)))
    x_prev0, x_next0 = pad0[:, :, :l], pad0[:, :, 2:]
    padm = jnp.pad(x, ((0, 0), (0, 0), (1, 1)), constant_values=-jnp.inf)
    maxp = jnp.maximum(x, jnp.maximum(padm[:, :, :l], padm[:, :, 2:]))
    avgp = (x_prev0 + x + x_next0) / 3.0

    def bn(y):
        m = jnp.mean(y, axis=(0, 2), keepdims=True)
        v = jnp.mean((y - m) ** 2, axis=(0, 2), keepdims=True)
        return (y - m) / jnp.sqrt(v + EPS)

    conv = (jnp.einsum('oc,ncl->nol', conv_w[0], x_prev0, precision=hi)
            + jnp.einsum('oc,ncl->nol', conv_w[1], x, precision=hi)
            + jnp.einsum('oc,ncl->nol', conv_w[2], x_next0, precision=hi))
    # weights[0] scales the 'none' op (zeros) -> omitted.
    return (weights[1] * x + weights[2] * bn(maxp)
            + weights[3] * bn(avgp) + weights[4] * conv)


if __name__ == "__main__":
    key = jax.random.PRNGKey(0)
    kx, kw, ka = jax.random.split(key, 3)

    B = 4   # several Branch instances (e.g. edges of a cell) in one pallas_call
    x = jax.random.normal(kx, (B, N, C, L), dtype=jnp.float32)
    # conv taps: (k, out_ch, in_ch) == PyTorch (O, I, 3) permuted
    conv_w = jax.random.normal(kw, (B, 3, C, C), dtype=jnp.float32) * 0.1
    # architecture weights, softmax-normalized like DARTS alphas
    weights = jax.nn.softmax(
        jax.random.normal(ka, (B, NUM_OPS), dtype=jnp.float32), axis=-1)

    out = jax.block_until_ready(branch_forward_batched(weights, x, conv_w))
    ref = jax.block_until_ready(jax.vmap(_ref_forward_one)(weights, x, conv_w))

    assert out.shape == (B, N, C, L) and out.dtype == jnp.float32
    err = float(jnp.max(jnp.abs(out - ref)))
    assert jnp.allclose(out, ref, atol=2e-4, rtol=2e-4), f"max abs err {err}"

    # Single-instance path (exact PyTorch module forward signature).
    out1 = jax.block_until_ready(branch_forward(weights[0], x[0], conv_w[0]))
    err1 = float(jnp.max(jnp.abs(out1 - ref[0])))
    assert jnp.allclose(out1, ref[0], atol=2e-4, rtol=2e-4), f"max abs err {err1}"

    print("KERNEL_OK")
</pallas_src>

<mosaic_0001>
module attributes {stable_mosaic.version = 11 : i64} {
  func.func @branch_kernel(%arg0: i32, %arg1: memref<8xf32, #tpu.memory_space<smem>>, %arg2: memref<2x2x8x128xf32, #tpu.memory_space<vmem>>, %arg3: memref<2x8x24xf32, #tpu.memory_space<vmem>>, %arg4: memref<2x2x8x128xf32, #tpu.memory_space<vmem>>) attributes {dimension_semantics = [#tpu.dimension_semantics<parallel>], iteration_bounds = array<i64: 2>, scalar_prefetch = 0 : i64, scratch_operands = 0 : i64, tpu.core_type = #tpu.core_type<tc>, window_params = [{transform_indices = @transform_0, window_bounds = array<i64: 8>}, {transform_indices = @transform_1, window_bounds = array<i64: 2, 2, 8, 128>}, {transform_indices = @transform_2, window_bounds = array<i64: 2, 8, 24>}, {transform_indices = @transform_3, window_bounds = array<i64: 2, 2, 8, 128>}]} {
    %0 = tpu.iota {dimensions = array<i32: 1>} : vector<8x128xi32>
    %c0_i32 = arith.constant 0 : i32
    %1 = vector.broadcast %c0_i32 : i32 to vector<8x128xi32>
    %2 = arith.cmpi eq, %0, %1 : vector<8x128xi32>
    %c127_i32 = arith.constant 127 : i32
    %3 = vector.broadcast %c127_i32 : i32 to vector<8x128xi32>
    %4 = arith.cmpi eq, %0, %3 : vector<8x128xi32>
    %c2_i32 = arith.constant 2 : i32
    %5 = arith.muli %arg0, %c2_i32 : i32
    %c0_i32_0 = arith.constant 0 : i32
    %6 = arith.addi %5, %c0_i32_0 : i32
    %c2_i32_1 = arith.constant 2 : i32
    %7 = arith.muli %c2_i32_1, %6 : i32
    %8 = arith.index_cast %7 : i32 to index
    %9 = memref.load %arg1[%8] : memref<8xf32, #tpu.memory_space<smem>>
    %c2_i32_2 = arith.constant 2 : i32
    %10 = arith.muli %c2_i32_2, %6 : i32
    %c1_i32 = arith.constant 1 : i32
    %11 = arith.addi %10, %c1_i32 : i32
    %12 = arith.index_cast %11 : i32 to index
    %13 = memref.load %arg1[%12] : memref<8xf32, #tpu.memory_space<smem>>
    %c0 = arith.constant 0 : index
    %c0_3 = arith.constant 0 : index
    %c0_4 = arith.constant 0 : index
    %14 = vector.load %arg3[%c0, %c0_3, %c0_4] : memref<2x8x24xf32, #tpu.memory_space<vmem>>, vector<1x8x24xf32>
    %15 = vector.shape_cast %14 : vector<1x8x24xf32> to vector<8x24xf32>
    %cst = arith.constant 0.000000e+00 : f32
    %16 = vector.broadcast %cst : f32 to vector<8x1xf32>
    %cst_5 = arith.constant 0.000000e+00 : f32
    %17 = vector.broadcast %cst_5 : f32 to vector<8x1xf32>
    %cst_6 = arith.constant 0.000000e+00 : f32
    %18 = vector.broadcast %cst_6 : f32 to vector<8x1xf32>
    %cst_7 = arith.constant 0.000000e+00 : f32
    %19 = vector.broadcast %cst_7 : f32 to vector<8x1xf32>
    %c0_8 = arith.constant 0 : index
    %c0_9 = arith.constant 0 : index
    %c0_10 = arith.constant 0 : index
    %c0_11 = arith.constant 0 : index
    %20 = vector.load %arg2[%c0_8, %c0_9, %c0_10, %c0_11] : memref<2x2x8x128xf32, #tpu.memory_space<vmem>>, vector<1x1x8x128xf32>
    %21 = vector.shape_cast %20 : vector<1x1x8x128xf32> to vector<8x128xf32>
    %c1_i32_12 = arith.constant 1 : i32
    %22 = tpu.dynamic_rotate %21 by %c1_i32_12 dim 1 : vector<8x128xf32>, i32 -> vector<8x128xf32>
    %c127_i32_13 = arith.constant 127 : i32
    %23 = tpu.dynamic_rotate %21 by %c127_i32_13 dim 1 : vector<8x128xf32>, i32 -> vector<8x128xf32>
    %cst_14 = arith.constant 0.000000e+00 : f32
    %24 = vector.broadcast %cst_14 : f32 to vector<8x128xf32>
    %25 = arith.select %2, %24, %22 : vector<8x128xi1>, vector<8x128xf32>
    %cst_15 = arith.constant 0.000000e+00 : f32
    %26 = vector.broadcast %cst_15 : f32 to vector<8x128xf32>
    %27 = arith.select %4, %26, %23 : vector<8x128xi1>, vector<8x128xf32>
    %28 = arith.select %2, %21, %22 : vector<8x128xi1>, vector<8x128xf32>
    %29 = arith.select %4, %21, %23 : vector<8x128xi1>, vector<8x128xf32>
    %30 = arith.maximumf %28, %29 : vector<8x128xf32>
    %31 = arith.maximumf %21, %30 : vector<8x128xf32>
    %32 = arith.addf %25, %21 : vector<8x128xf32>
    %33 = arith.addf %32, %27 : vector<8x128xf32>
    %cst_16 = arith.constant 0.333333343 : f32
    %34 = vector.broadcast %cst_16 : f32 to vector<8x128xf32>
    %35 = arith.mulf %33, %34 : vector<8x128xf32>
    %36 = tpu.concatenate %25, %21, %27 in 0 : vector<8x128xf32>, vector<8x128xf32>, vector<8x128xf32> -> vector<24x128xf32>
    %cst_17 = arith.constant dense<0.000000e+00> : vector<8x128xf32>
    %37 = tpu.matmul %15, %36, %cst_17 {dimension_numbers = #tpu.dot_dimension_numbers<[1], [0], [0], [1], [0, 0, 1, 1], [], []>, precision = #tpu.contract_precision<fp32>} : vector<8x24xf32>, vector<24x128xf32>, vector<8x128xf32> -> vector<8x128xf32>
    %cst_18 = arith.constant dense<0.000000e+00> : vector<8xf32>
    %38 = vector.multi_reduction <add>, %31, %cst_18 [1] : vector<8x128xf32> to vector<8xf32>
    %39 = vector.shape_cast %38 : vector<8xf32> to vector<8x1xf32>
    %40 = arith.addf %16, %39 : vector<8x1xf32>
    %41 = arith.mulf %31, %31 : vector<8x128xf32>
    %cst_19 = arith.constant dense<0.000000e+00> : vector<8xf32>
    %42 = vector.multi_reduction <add>, %41, %cst_19 [1] : vector<8x128xf32> to vector<8xf32>
    %43 = vector.shape_cast %42 : vector<8xf32> to vector<8x1xf32>
    %44 = arith.addf %17, %43 : vector<8x1xf32>
    %cst_20 = arith.constant dense<0.000000e+00> : vector<8xf32>
    %45 = vector.multi_reduction <add>, %35, %cst_20 [1] : vector<8x128xf32> to vector<8xf32>
    %46 = vector.shape_cast %45 : vector<8xf32> to vector<8x1xf32>
    %47 = arith.addf %18, %46 : vector<8x1xf32>
    %48 = arith.mulf %35, %35 : vector<8x128xf32>
    %cst_21 = arith.constant dense<0.000000e+00> : vector<8xf32>
    %49 = vector.multi_reduction <add>, %48, %cst_21 [1] : vector<8x128xf32> to vector<8xf32>
    %50 = vector.shape_cast %49 : vector<8xf32> to vector<8x1xf32>
    %51 = arith.addf %19, %50 : vector<8x1xf32>
    %c0_22 = arith.constant 0 : index
    %c1 = arith.constant 1 : index
    %c0_23 = arith.constant 0 : index
    %c0_24 = arith.constant 0 : index
    %52 = vector.load %arg2[%c0_22, %c1, %c0_23, %c0_24] : memref<2x2x8x128xf32, #tpu.memory_space<vmem>>, vector<1x1x8x128xf32>
    %53 = vector.shape_cast %52 : vector<1x1x8x128xf32> to vector<8x128xf32>
    %c1_i32_25 = arith.constant 1 : i32
    %54 = tpu.dynamic_rotate %53 by %c1_i32_25 dim 1 : vector<8x128xf32>, i32 -> vector<8x128xf32>
    %c127_i32_26 = arith.constant 127 : i32
    %55 = tpu.dynamic_rotate %53 by %c127_i32_26 dim 1 : vector<8x128xf32>, i32 -> vector<8x128xf32>
    %cst_27 = arith.constant 0.000000e+00 : f32
    %56 = vector.broadcast %cst_27 : f32 to vector<8x128xf32>
    %57 = arith.select %2, %56, %54 : vector<8x128xi1>, vector<8x128xf32>
    %cst_28 = arith.constant 0.000000e+00 : f32
    %58 = vector.broadcast %cst_28 : f32 to vector<8x128xf32>
    %59 = arith.select %4, %58, %55 : vector<8x128xi1>, vector<8x128xf32>
    %60 = arith.select %2, %53, %54 : vector<8x128xi1>, vector<8x128xf32>
    %61 = arith.select %4, %53, %55 : vector<8x128xi1>, vector<8x128xf32>
    %62 = arith.maximumf %60, %61 : vector<8x128xf32>
    %63 = arith.maximumf %53, %62 : vector<8x128xf32>
    %64 = arith.addf %57, %53 : vector<8x128xf32>
    %65 = arith.addf %64, %59 : vector<8x128xf32>
    %cst_29 = arith.constant 0.333333343 : f32
    %66 = vector.broadcast %cst_29 : f32 to vector<8x128xf32>
    %67 = arith.mulf %65, %66 : vector<8x128xf32>
    %68 = tpu.concatenate %57, %53, %59 in 0 : vector<8x128xf32>, vector<8x128xf32>, vector<8x128xf32> -> vector<24x128xf32>
    %cst_30 = arith.constant dense<0.000000e+00> : vector<8x128xf32>
    %69 = tpu.matmul %15, %68, %cst_30 {dimension_numbers = #tpu.dot_dimension_numbers<[1], [0], [0], [1], [0, 0, 1, 1], [], []>, precision = #tpu.contract_precision<fp32>} : vector<8x24xf32>, vector<24x128xf32>, vector<8x128xf32> -> vector<8x128xf32>
    %cst_31 = arith.constant dense<0.000000e+00> : vector<8xf32>
    %70 = vector.multi_reduction <add>, %63, %cst_31 [1] : vector<8x128xf32> to vector<8xf32>
    %71 = vector.shape_cast %70 : vector<8xf32> to vector<8x1xf32>
    %72 = arith.addf %40, %71 : vector<8x1xf32>
    %73 = arith.mulf %63, %63 : vector<8x128xf32>
    %cst_32 = arith.constant dense<0.000000e+00> : vector<8xf32>
    %74 = vector.multi_reduction <add>, %73, %cst_32 [1] : vector<8x128xf32> to vector<8xf32>
    %75 = vector.shape_cast %74 : vector<8xf32> to vector<8x1xf32>
    %76 = arith.addf %44, %75 : vector<8x1xf32>
    %cst_33 = arith.constant dense<0.000000e+00> : vector<8xf32>
    %77 = vector.multi_reduction <add>, %67, %cst_33 [1] : vector<8x128xf32> to vector<8xf32>
    %78 = vector.shape_cast %77 : vector<8xf32> to vector<8x1xf32>
    %79 = arith.addf %47, %78 : vector<8x1xf32>
    %80 = arith.mulf %67, %67 : vector<8x128xf32>
    %cst_34 = arith.constant dense<0.000000e+00> : vector<8xf32>
    %81 = vector.multi_reduction <add>, %80, %cst_34 [1] : vector<8x128xf32> to vector<8xf32>
    %82 = vector.shape_cast %81 : vector<8xf32> to vector<8x1xf32>
    %83 = arith.addf %51, %82 : vector<8x1xf32>
    %cst_35 = arith.constant 3.906250e-03 : f32
    %84 = vector.broadcast %cst_35 : f32 to vector<8x1xf32>
    %85 = arith.mulf %72, %84 : vector<8x1xf32>
    %cst_36 = arith.constant 3.906250e-03 : f32
    %86 = vector.broadcast %cst_36 : f32 to vector<8x1xf32>
    %87 = arith.mulf %76, %86 : vector<8x1xf32>
    %88 = arith.mulf %85, %85 : vector<8x1xf32>
    %89 = arith.subf %87, %88 : vector<8x1xf32>
    %cst_37 = arith.constant 0.000000e+00 : f32
    %90 = vector.broadcast %cst_37 : f32 to vector<8x1xf32>
    %91 = arith.maximumf %89, %90 : vector<8x1xf32>
    %cst_38 = arith.constant 9.99999974E-6 : f32
    %92 = vector.broadcast %cst_38 : f32 to vector<8x1xf32>
    %93 = arith.addf %91, %92 : vector<8x1xf32>
    %94 = math.rsqrt %93 : vector<8x1xf32>
    %95 = vector.broadcast %9 : f32 to vector<8x1xf32>
    %96 = arith.mulf %95, %94 : vector<8x1xf32>
    %cst_39 = arith.constant 0.000000e+00 : f32
    %97 = vector.broadcast %cst_39 : f32 to vector<8x1xf32>
    %98 = arith.subf %97, %85 : vector<8x1xf32>
    %99 = arith.mulf %98, %96 : vector<8x1xf32>
    %cst_40 = arith.constant 3.906250e-03 : f32
    %100 = vector.broadcast %cst_40 : f32 to vector<8x1xf32>
    %101 = arith.mulf %79, %100 : vector<8x1xf32>
    %cst_41 = arith.constant 3.906250e-03 : f32
    %102 = vector.broadcast %cst_41 : f32 to vector<8x1xf32>
    %103 = arith.mulf %83, %102 : vector<8x1xf32>
    %104 = arith.mulf %101, %101 : vector<8x1xf32>
    %105 = arith.subf %103, %104 : vector<8x1xf32>
    %cst_42 = arith.constant 0.000000e+00 : f32
    %106 = vector.broadcast %cst_42 : f32 to vector<8x1xf32>
    %107 = arith.maximumf %105, %106 : vector<8x1xf32>
    %cst_43 = arith.constant 9.99999974E-6 : f32
    %108 = vector.broadcast %cst_43 : f32 to vector<8x1xf32>
    %109 = arith.addf %107, %108 : vector<8x1xf32>
    %110 = math.rsqrt %109 : vector<8x1xf32>
    %111 = vector.broadcast %13 : f32 to vector<8x1xf32>
    %112 = arith.mulf %111, %110 : vector<8x1xf32>
    %cst_44 = arith.constant 0.000000e+00 : f32
    %113 = vector.broadcast %cst_44 : f32 to vector<8x1xf32>
    %114 = arith.subf %113, %101 : vector<8x1xf32>
    %115 = arith.mulf %114, %112 : vector<8x1xf32>
    %116 = vector.broadcast %96 : vector<8x1xf32> to vector<8x128xf32>
    %117 = arith.mulf %31, %116 : vector<8x128xf32>
    %118 = arith.addf %37, %117 : vector<8x128xf32>
    %119 = vector.broadcast %99 : vector<8x1xf32> to vector<8x128xf32>
    %120 = arith.addf %118, %119 : vector<8x128xf32>
    %121 = vector.broadcast %112 : vector<8x1xf32> to vector<8x128xf32>
    %122 = arith.mulf %35, %121 : vector<8x128xf32>
    %123 = arith.addf %120, %122 : vector<8x128xf32>
    %124 = vector.broadcast %115 : vector<8x1xf32> to vector<8x128xf32>
    %125 = arith.addf %123, %124 : vector<8x128xf32>
    %c0_45 = arith.constant 0 : index
    %c0_46 = arith.constant 0 : index
    %c0_47 = arith.constant 0 : index
    %c0_48 = arith.constant 0 : index
    %126 = vector.load %arg4[%c0_45, %c0_46, %c0_47, %c0_48] : memref<2x2x8x128xf32, #tpu.memory_space<vmem>>, vector<1x1x8x128xf32>
    %127 = vector.shape_cast %126 : vector<1x1x8x128xf32> to vector<8x128xf32>
    %128 = vector.shape_cast %125 : vector<8x128xf32> to vector<1x1x8x128xf32>
    tpu.vector_store %arg4[%c0_45, %c0_46, %c0_47, %c0_48], %128 {strides = array<i32>} : memref<2x2x8x128xf32, #tpu.memory_space<vmem>>, vector<1x1x8x128xf32>,
    %129 = vector.broadcast %96 : vector<8x1xf32> to vector<8x128xf32>
    %130 = arith.mulf %63, %129 : vector<8x128xf32>
    %131 = arith.addf %69, %130 : vector<8x128xf32>
    %132 = vector.broadcast %99 : vector<8x1xf32> to vector<8x128xf32>
    %133 = arith.addf %131, %132 : vector<8x128xf32>
    %134 = vector.broadcast %112 : vector<8x1xf32> to vector<8x128xf32>
    %135 = arith.mulf %67, %134 : vector<8x128xf32>
    %136 = arith.addf %133, %135 : vector<8x128xf32>
    %137 = vector.broadcast %115 : vector<8x1xf32> to vector<8x128xf32>
    %138 = arith.addf %136, %137 : vector<8x128xf32>
    %c0_49 = arith.constant 0 : index
    %c1_50 = arith.constant 1 : index
    %c0_51 = arith.constant 0 : index
    %c0_52 = arith.constant 0 : index
    %139 = vector.load %arg4[%c0_49, %c1_50, %c0_51, %c0_52] : memref<2x2x8x128xf32, #tpu.memory_space<vmem>>, vector<1x1x8x128xf32>
    %140 = vector.shape_cast %139 : vector<1x1x8x128xf32> to vector<8x128xf32>
    %141 = vector.shape_cast %138 : vector<8x128xf32> to vector<1x1x8x128xf32>
    tpu.vector_store %arg4[%c0_49, %c1_50, %c0_51, %c0_52], %141 {strides = array<i32>} : memref<2x2x8x128xf32, #tpu.memory_space<vmem>>, vector<1x1x8x128xf32>,
    %c2_i32_53 = arith.constant 2 : i32
    %142 = arith.muli %arg0, %c2_i32_53 : i32
    %c1_i32_54 = arith.constant 1 : i32
    %143 = arith.addi %142, %c1_i32_54 : i32
    %c2_i32_55 = arith.constant 2 : i32
    %144 = arith.muli %c2_i32_55, %143 : i32
    %145 = arith.index_cast %144 : i32 to index
    %146 = memref.load %arg1[%145] : memref<8xf32, #tpu.memory_space<smem>>
    %c2_i32_56 = arith.constant 2 : i32
    %147 = arith.muli %c2_i32_56, %143 : i32
    %c1_i32_57 = arith.constant 1 : i32
    %148 = arith.addi %147, %c1_i32_57 : i32
    %149 = arith.index_cast %148 : i32 to index
    %150 = memref.load %arg1[%149] : memref<8xf32, #tpu.memory_space<smem>>
    %c1_58 = arith.constant 1 : index
    %c0_59 = arith.constant 0 : index
    %c0_60 = arith.constant 0 : index
    %151 = vector.load %arg3[%c1_58, %c0_59, %c0_60] : memref<2x8x24xf32, #tpu.memory_space<vmem>>, vector<1x8x24xf32>
    %152 = vector.shape_cast %151 : vector<1x8x24xf32> to vector<8x24xf32>
    %cst_61 = arith.constant 0.000000e+00 : f32
    %153 = vector.broadcast %cst_61 : f32 to vector<8x1xf32>
    %cst_62 = arith.constant 0.000000e+00 : f32
    %154 = vector.broadcast %cst_62 : f32 to vector<8x1xf32>
    %cst_63 = arith.constant 0.000000e+00 : f32
    %155 = vector.broadcast %cst_63 : f32 to vector<8x1xf32>
    %cst_64 = arith.constant 0.000000e+00 : f32
    %156 = vector.broadcast %cst_64 : f32 to vector<8x1xf32>
    %c1_65 = arith.constant 1 : index
    %c0_66 = arith.constant 0 : index
    %c0_67 = arith.constant 0 : index
    %c0_68 = arith.constant 0 : index
    %157 = vector.load %arg2[%c1_65, %c0_66, %c0_67, %c0_68] : memref<2x2x8x128xf32, #tpu.memory_space<vmem>>, vector<1x1x8x128xf32>
    %158 = vector.shape_cast %157 : vector<1x1x8x128xf32> to vector<8x128xf32>
    %c1_i32_69 = arith.constant 1 : i32
    %159 = tpu.dynamic_rotate %158 by %c1_i32_69 dim 1 : vector<8x128xf32>, i32 -> vector<8x128xf32>
    %c127_i32_70 = arith.constant 127 : i32
    %160 = tpu.dynamic_rotate %158 by %c127_i32_70 dim 1 : vector<8x128xf32>, i32 -> vector<8x128xf32>
    %cst_71 = arith.constant 0.000000e+00 : f32
    %161 = vector.broadcast %cst_71 : f32 to vector<8x128xf32>
    %162 = arith.select %2, %161, %159 : vector<8x128xi1>, vector<8x128xf32>
    %cst_72 = arith.constant 0.000000e+00 : f32
    %163 = vector.broadcast %cst_72 : f32 to vector<8x128xf32>
    %164 = arith.select %4, %163, %160 : vector<8x128xi1>, vector<8x128xf32>
    %165 = arith.select %2, %158, %159 : vector<8x128xi1>, vector<8x128xf32>
    %166 = arith.select %4, %158, %160 : vector<8x128xi1>, vector<8x128xf32>
    %167 = arith.maximumf %165, %166 : vector<8x128xf32>
    %168 = arith.maximumf %158, %167 : vector<8x128xf32>
    %169 = arith.addf %162, %158 : vector<8x128xf32>
    %170 = arith.addf %169, %164 : vector<8x128xf32>
    %cst_73 = arith.constant 0.333333343 : f32
    %171 = vector.broadcast %cst_73 : f32 to vector<8x128xf32>
    %172 = arith.mulf %170, %171 : vector<8x128xf32>
    %173 = tpu.concatenate %162, %158, %164 in 0 : vector<8x128xf32>, vector<8x128xf32>, vector<8x128xf32> -> vector<24x128xf32>
    %cst_74 = arith.constant dense<0.000000e+00> : vector<8x128xf32>
    %174 = tpu.matmul %152, %173, %cst_74 {dimension_numbers = #tpu.dot_dimension_numbers<[1], [0], [0], [1], [0, 0, 1, 1], [], []>, precision = #tpu.contract_precision<fp32>} : vector<8x24xf32>, vector<24x128xf32>, vector<8x128xf32> -> vector<8x128xf32>
    %cst_75 = arith.constant dense<0.000000e+00> : vector<8xf32>
    %175 = vector.multi_reduction <add>, %168, %cst_75 [1] : vector<8x128xf32> to vector<8xf32>
    %176 = vector.shape_cast %175 : vector<8xf32> to vector<8x1xf32>
    %177 = arith.addf %153, %176 : vector<8x1xf32>
    %178 = arith.mulf %168, %168 : vector<8x128xf32>
    %cst_76 = arith.constant dense<0.000000e+00> : vector<8xf32>
    %179 = vector.multi_reduction <add>, %178, %cst_76 [1] : vector<8x128xf32> to vector<8xf32>
    %180 = vector.shape_cast %179 : vector<8xf32> to vector<8x1xf32>
    %181 = arith.addf %154, %180 : vector<8x1xf32>
    %cst_77 = arith.constant dense<0.000000e+00> : vector<8xf32>
    %182 = vector.multi_reduction <add>, %172, %cst_77 [1] : vector<8x128xf32> to vector<8xf32>
    %183 = vector.shape_cast %182 : vector<8xf32> to vector<8x1xf32>
    %184 = arith.addf %155, %183 : vector<8x1xf32>
    %185 = arith.mulf %172, %172 : vector<8x128xf32>
    %cst_78 = arith.constant dense<0.000000e+00> : vector<8xf32>
    %186 = vector.multi_reduction <add>, %185, %cst_78 [1] : vector<8x128xf32> to vector<8xf32>
    %187 = vector.shape_cast %186 : vector<8xf32> to vector<8x1xf32>
    %188 = arith.addf %156, %187 : vector<8x1xf32>
    %c1_79 = arith.constant 1 : index
    %c1_80 = arith.constant 1 : index
    %c0_81 = arith.constant 0 : index
    %c0_82 = arith.constant 0 : index
    %189 = vector.load %arg2[%c1_79, %c1_80, %c0_81, %c0_82] : memref<2x2x8x128xf32, #tpu.memory_space<vmem>>, vector<1x1x8x128xf32>
    %190 = vector.shape_cast %189 : vector<1x1x8x128xf32> to vector<8x128xf32>
    %c1_i32_83 = arith.constant 1 : i32
    %191 = tpu.dynamic_rotate %190 by %c1_i32_83 dim 1 : vector<8x128xf32>, i32 -> vector<8x128xf32>
    %c127_i32_84 = arith.constant 127 : i32
    %192 = tpu.dynamic_rotate %190 by %c127_i32_84 dim 1 : vector<8x128xf32>, i32 -> vector<8x128xf32>
    %cst_85 = arith.constant 0.000000e+00 : f32
    %193 = vector.broadcast %cst_85 : f32 to vector<8x128xf32>
    %194 = arith.select %2, %193, %191 : vector<8x128xi1>, vector<8x128xf32>
    %cst_86 = arith.constant 0.000000e+00 : f32
    %195 = vector.broadcast %cst_86 : f32 to vector<8x128xf32>
    %196 = arith.select %4, %195, %192 : vector<8x128xi1>, vector<8x128xf32>
    %197 = arith.select %2, %190, %191 : vector<8x128xi1>, vector<8x128xf32>
    %198 = arith.select %4, %190, %192 : vector<8x128xi1>, vector<8x128xf32>
    %199 = arith.maximumf %197, %198 : vector<8x128xf32>
    %200 = arith.maximumf %190, %199 : vector<8x128xf32>
    %201 = arith.addf %194, %190 : vector<8x128xf32>
    %202 = arith.addf %201, %196 : vector<8x128xf32>
    %cst_87 = arith.constant 0.333333343 : f32
    %203 = vector.broadcast %cst_87 : f32 to vector<8x128xf32>
    %204 = arith.mulf %202, %203 : vector<8x128xf32>
    %205 = tpu.concatenate %194, %190, %196 in 0 : vector<8x128xf32>, vector<8x128xf32>, vector<8x128xf32> -> vector<24x128xf32>
    %cst_88 = arith.constant dense<0.000000e+00> : vector<8x128xf32>
    %206 = tpu.matmul %152, %205, %cst_88 {dimension_numbers = #tpu.dot_dimension_numbers<[1], [0], [0], [1], [0, 0, 1, 1], [], []>, precision = #tpu.contract_precision<fp32>} : vector<8x24xf32>, vector<24x128xf32>, vector<8x128xf32> -> vector<8x128xf32>
    %cst_89 = arith.constant dense<0.000000e+00> : vector<8xf32>
    %207 = vector.multi_reduction <add>, %200, %cst_89 [1] : vector<8x128xf32> to vector<8xf32>
    %208 = vector.shape_cast %207 : vector<8xf32> to vector<8x1xf32>
    %209 = arith.addf %177, %208 : vector<8x1xf32>
    %210 = arith.mulf %200, %200 : vector<8x128xf32>
    %cst_90 = arith.constant dense<0.000000e+00> : vector<8xf32>
    %211 = vector.multi_reduction <add>, %210, %cst_90 [1] : vector<8x128xf32> to vector<8xf32>
    %212 = vector.shape_cast %211 : vector<8xf32> to vector<8x1xf32>
    %213 = arith.addf %181, %212 : vector<8x1xf32>
    %cst_91 = arith.constant dense<0.000000e+00> : vector<8xf32>
    %214 = vector.multi_reduction <add>, %204, %cst_91 [1] : vector<8x128xf32> to vector<8xf32>
    %215 = vector.shape_cast %214 : vector<8xf32> to vector<8x1xf32>
    %216 = arith.addf %184, %215 : vector<8x1xf32>
    %217 = arith.mulf %204, %204 : vector<8x128xf32>
    %cst_92 = arith.constant dense<0.000000e+00> : vector<8xf32>
    %218 = vector.multi_reduction <add>, %217, %cst_92 [1] : vector<8x128xf32> to vector<8xf32>
    %219 = vector.shape_cast %218 : vector<8xf32> to vector<8x1xf32>
    %220 = arith.addf %188, %219 : vector<8x1xf32>
    %cst_93 = arith.constant 3.906250e-03 : f32
    %221 = vector.broadcast %cst_93 : f32 to vector<8x1xf32>
    %222 = arith.mulf %209, %221 : vector<8x1xf32>
    %cst_94 = arith.constant 3.906250e-03 : f32
    %223 = vector.broadcast %cst_94 : f32 to vector<8x1xf32>
    %224 = arith.mulf %213, %223 : vector<8x1xf32>
    %225 = arith.mulf %222, %222 : vector<8x1xf32>
    %226 = arith.subf %224, %225 : vector<8x1xf32>
    %cst_95 = arith.constant 0.000000e+00 : f32
    %227 = vector.broadcast %cst_95 : f32 to vector<8x1xf32>
    %228 = arith.maximumf %226, %227 : vector<8x1xf32>
    %cst_96 = arith.constant 9.99999974E-6 : f32
    %229 = vector.broadcast %cst_96 : f32 to vector<8x1xf32>
    %230 = arith.addf %228, %229 : vector<8x1xf32>
    %231 = math.rsqrt %230 : vector<8x1xf32>
    %232 = vector.broadcast %146 : f32 to vector<8x1xf32>
    %233 = arith.mulf %232, %231 : vector<8x1xf32>
    %cst_97 = arith.constant 0.000000e+00 : f32
    %234 = vector.broadcast %cst_97 : f32 to vector<8x1xf32>
    %235 = arith.subf %234, %222 : vector<8x1xf32>
    %236 = arith.mulf %235, %233 : vector<8x1xf32>
    %cst_98 = arith.constant 3.906250e-03 : f32
    %237 = vector.broadcast %cst_98 : f32 to vector<8x1xf32>
    %238 = arith.mulf %216, %237 : vector<8x1xf32>
    %cst_99 = arith.constant 3.906250e-03 : f32
    %239 = vector.broadcast %cst_99 : f32 to vector<8x1xf32>
    %240 = arith.mulf %220, %239 : vector<8x1xf32>
    %241 = arith.mulf %238, %238 : vector<8x1xf32>
    %242 = arith.subf %240, %241 : vector<8x1xf32>
    %cst_100 = arith.constant 0.000000e+00 : f32
    %243 = vector.broadcast %cst_100 : f32 to vector<8x1xf32>
    %244 = arith.maximumf %242, %243 : vector<8x1xf32>
    %cst_101 = arith.constant 9.99999974E-6 : f32
    %245 = vector.broadcast %cst_101 : f32 to vector<8x1xf32>
    %246 = arith.addf %244, %245 : vector<8x1xf32>
    %247 = math.rsqrt %246 : vector<8x1xf32>
    %248 = vector.broadcast %150 : f32 to vector<8x1xf32>
    %249 = arith.mulf %248, %247 : vector<8x1xf32>
    %cst_102 = arith.constant 0.000000e+00 : f32
    %250 = vector.broadcast %cst_102 : f32 to vector<8x1xf32>
    %251 = arith.subf %250, %238 : vector<8x1xf32>
    %252 = arith.mulf %251, %249 : vector<8x1xf32>
    %253 = vector.broadcast %233 : vector<8x1xf32> to vector<8x128xf32>
    %254 = arith.mulf %168, %253 : vector<8x128xf32>
    %255 = arith.addf %174, %254 : vector<8x128xf32>
    %256 = vector.broadcast %236 : vector<8x1xf32> to vector<8x128xf32>
    %257 = arith.addf %255, %256 : vector<8x128xf32>
    %258 = vector.broadcast %249 : vector<8x1xf32> to vector<8x128xf32>
    %259 = arith.mulf %172, %258 : vector<8x128xf32>
    %260 = arith.addf %257, %259 : vector<8x128xf32>
    %261 = vector.broadcast %252 : vector<8x1xf32> to vector<8x128xf32>
    %262 = arith.addf %260, %261 : vector<8x128xf32>
    %c1_103 = arith.constant 1 : index
    %c0_104 = arith.constant 0 : index
    %c0_105 = arith.constant 0 : index
    %c0_106 = arith.constant 0 : index
    %263 = vector.load %arg4[%c1_103, %c0_104, %c0_105, %c0_106] : memref<2x2x8x128xf32, #tpu.memory_space<vmem>>, vector<1x1x8x128xf32>
    %264 = vector.shape_cast %263 : vector<1x1x8x128xf32> to vector<8x128xf32>
    %265 = vector.shape_cast %262 : vector<8x128xf32> to vector<1x1x8x128xf32>
    tpu.vector_store %arg4[%c1_103, %c0_104, %c0_105, %c0_106], %265 {strides = array<i32>} : memref<2x2x8x128xf32, #tpu.memory_space<vmem>>, vector<1x1x8x128xf32>,
    %266 = vector.broadcast %233 : vector<8x1xf32> to vector<8x128xf32>
    %267 = arith.mulf %200, %266 : vector<8x128xf32>
    %268 = arith.addf %206, %267 : vector<8x128xf32>
    %269 = vector.broadcast %236 : vector<8x1xf32> to vector<8x128xf32>
    %270 = arith.addf %268, %269 : vector<8x128xf32>
    %271 = vector.broadcast %249 : vector<8x1xf32> to vector<8x128xf32>
    %272 = arith.mulf %204, %271 : vector<8x128xf32>
    %273 = arith.addf %270, %272 : vector<8x128xf32>
    %274 = vector.broadcast %252 : vector<8x1xf32> to vector<8x128xf32>
    %275 = arith.addf %273, %274 : vector<8x128xf32>
    %c1_107 = arith.constant 1 : index
    %c1_108 = arith.constant 1 : index
    %c0_109 = arith.constant 0 : index
    %c0_110 = arith.constant 0 : index
    %276 = vector.load %arg4[%c1_107, %c1_108, %c0_109, %c0_110] : memref<2x2x8x128xf32, #tpu.memory_space<vmem>>, vector<1x1x8x128xf32>
    %277 = vector.shape_cast %276 : vector<1x1x8x128xf32> to vector<8x128xf32>
    %278 = vector.shape_cast %275 : vector<8x128xf32> to vector<1x1x8x128xf32>
    tpu.vector_store %arg4[%c1_107, %c1_108, %c0_109, %c0_110], %278 {strides = array<i32>} : memref<2x2x8x128xf32, #tpu.memory_space<vmem>>, vector<1x1x8x128xf32>,
    return
  }
  func.func @transform_0(%arg0: i32) -> i32 {
    %c0_i32 = arith.constant 0 : i32
    %c0_i32_0 = arith.constant 0 : i32
    return %c0_i32 : i32
  }
  func.func @transform_1(%arg0: i32) -> (i32, i32, i32, i32) {
    %c0_i32 = arith.constant 0 : i32
    %c0_i32_0 = arith.constant 0 : i32
    %c0_i32_1 = arith.constant 0 : i32
    %c0_i32_2 = arith.constant 0 : i32
    return %arg0, %c0_i32, %c0_i32_0, %c0_i32_1 : i32, i32, i32, i32
  }
  func.func @transform_2(%arg0: i32) -> (i32, i32, i32) {
    %c0_i32 = arith.constant 0 : i32
    %c0_i32_0 = arith.constant 0 : i32
    %c0_i32_1 = arith.constant 0 : i32
    return %arg0, %c0_i32, %c0_i32_0 : i32, i32, i32
  }
  func.func @transform_3(%arg0: i32) -> (i32, i32, i32, i32) {
    %c0_i32 = arith.constant 0 : i32
    %c0_i32_0 = arith.constant 0 : i32
    %c0_i32_1 = arith.constant 0 : i32
    %c0_i32_2 = arith.constant 0 : i32
    return %arg0, %c0_i32, %c0_i32_0, %c0_i32_1 : i32, i32, i32, i32
  }
}

</mosaic_0001>

<bundles_post_ra>
// kernel: branch_forward_batched.1
= control target key start
LH: loop header
LB: loop body
LE: loop exit
PB: predicated region body
PF: predicated region fallthrough
CT: control target
= control target key end

     0   :  { %8 = vsyncpa [#allocation4], 0  ;;  %s3529_s0 = inlined_call_operand.vmem [shape: f32[8], index: 0, kind: input, shape index: {}]   ;;  %s3530_s1 = inlined_call_operand.vmem [shape: f32[4,2,8,128], index: 1, kind: input, shape index: {}]   ;;  %s3531_s2 = inlined_call_operand.vmem [shape: f32[4,8,24], index: 2, kind: input, shape index: {}]   ;;  %s3532_s3 = inlined_call_operand.hbm [shape: f32[4,2,8,128], index: 3, kind: output, shape index: {}]  }
   0x1   :  { %9 = vsyncpa [#allocation3], 0 }
   0x2   :  { %11 = vsyncpa [#allocation3 + $0x1], 0  ;;  %s3005_s12 = smov 0   ;;  %s3007_s13 = smov 0  }
   0x3   :  { %s3009_s14 = smov 0   ;;  %s3011_s15 = smov 0  }
   0x4 LB: > { %s3026_s16 = sadd.s32 4294967295, %s2974_s15   ;;  %s2410_s17 = sadd.s32 4294967294, %s2974_s15   ;;  %s2974_s15 = sphi %s3011_s15, %s3539_s15   ;;  %s2970_s14 = sphi %s3009_s14, %s3538_s14   ;;  %s2966_s13 = sphi %s3007_s13, %s3537_s13   ;;  %s2962_s12 = sphi %s3005_s12, %s3536_s12  }
   0x5   : > { %s3030_s18 = sadd.s32 1, %s2974_s15   ;;  %s97_s19 = sadd.s32 1, %s2970_s14 }
   0x6   : > { %s94_s20 = ssub.s32 %s2974_s15, %s3030_s18  ;;  %p107_p0 = scmp.ne.s32.totalorder %s2970_s14, %s2966_s13 }
   0x7   : > { %p95_p1 = scmp.eq.s32.totalorder %s94_s20, 0  ;;  %p108_p2 = scmp.eq.s32.totalorder %s3026_s16, 1 }
   0x8   : > { %p113_p3 = scmp.ne.s32.totalorder %s2966_s13, %s2962_s12  ;;  %p114_p4 = scmp.eq.s32.totalorder %s2410_s17, 1 }
   0x9   : > { %s3041_s21 = scalar_select %p95_p1, %s2970_s14, %s97_s19  }
   0xa   : > { %p3043_p5 = por %p108_p2, %p107_p0  ;;  %p3047_p6 = por %p114_p4, %p113_p3 }
   0xb   : > { %p2411_p7 = scmp.ge.s32.totalorder %s2974_s15, 1  ;;  %p121_p8 = scmp.lt.s32.totalorder %s2974_s15, 3 }
   0xc   : > { %p2842_p9 = scmp.eq.s32.totalorder %s3026_s16, 0  ;;  %s134_s27 = sshll.u32 %s3529_s0, 4  ;;  %s135_s27 = int_to_ptr.vmem [resolvable:$true] %s134_s27 }
   0xd   : > { %p3054_p10 = pnand %p2411_p7, %p121_p8  ;;  %s2893_s28 = scalar_lea.vmem %s135_s27, 16 }
   0xe   : > { %p2894_p13 = scmp.ne.s32.totalorder %s135_s27, %s2893_s28  ;;  %p2901_p3 = scmp.lt.s32.totalorder %s135_s27, %s135_s27 }
   0xf   : > { %p2834_p11 = pneg %p3054_p10  ;;  %p2902_p4 = scmp.lt.s32.totalorder %s2893_s28, %s2893_s28 }
  0x11   : > { %p2835_p12 = pnand %p2842_p9, %p2834_p11  ;;  %p2903_p7 = por %p2902_p4, %p2901_p3 }
  0x13   : > { %p2895_p0 = pneg %p2835_p12 }
  0x15   : > { %p2896_p1 = pnand %p2895_p0, %p2894_p13 }
  0x17   : > { %p2897_p2 = pneg %p2896_p1 }
  0x19   : > { %p2904_p8 = pnand %p2903_p7, %p2897_p2 }
  0x1b   : > { %2907 = shalt.err (!%p2904_p8)
}
  0x1c   : > { %s2976_s29 = smov [#allocation2]   ;;  %166 = sbr.rel (%p3054_p10) target bundleno = 486 (0x1e6), region = 32 }
  0x1d   : > { %2837 = dma.vmem_to_smem (!%p2835_p12), %s135_s27, 16, %s2976_s29, [#allocation4]  }
  0x23   : > { %2953 = dma.done.wait (%p2842_p9), [#allocation4], 16  }
  0x24   : > { %2955 = vsyncadd (%p2842_p9), [#allocation4], 4294967280 }
  0x25   : > { %172 = sfence }
  0x26   : > { %s2417_s30 = sshll.u32 %s3026_s16, 1  ;;  %v2977_v0 = vmov 0.0|0.0   ;;  %vm2978_vm0 = vmmov 0   ;;  %v2979_v1 = vmov 0.0   ;;  %s2980_s8 = smov 1   ;;  %vm300_vm1 = vcmask 195584  }
  0x27   : > { %p198_p11 = scmp.lt.s32.totalorder %s2417_s30, 3  ;;  %2756 = vmatprep.subr.bf16.mxu0 %v2977_v0  ;;  %2759 = vmatprep.subr.bf16.mxu1 %v2977_v0  ;;  %s2981_s9 = smov 127   ;;  %v211_v8 = vlaneseq }
  0x28   : > { %2546 = vmatprep.mubr.msk.f32.mxu0 %vm2978_vm0, %v2979_v1  ;;  %2555 = vmatprep.mubr.msk.f32.mxu1 %vm2978_vm0, %v2979_v1  ;;  %s3445_s20 = sshll.u32 %s3026_s16, 2  ;;  %s194_s27 = sand.u32 1, %s2966_s13  }
  0x29   : > { %s3541_s30 = smov (!%p198_p11, %s2417_s30), 3  ;;  %v3106_v10 = vand.u32 127, %v211_v8  ;;  %s216_s24 = sld [smem:[#allocation2 + %s3445_s20]] }
  0x2a   : > { %s2438_s4 = sshll.u32 %s3541_s30, 4  ;;  %s2421_s10 = sshll.u32 %s3541_s30, 3 }
  0x2b   : > { %s202_s7 = scalar_lea.vmem %s3530_s1, %s2438_s4  ;;  %s3100_s19 = scalar_lea.vmem %s3531_s2, %s2421_s10  ;;  %vm213_vm2 = vcmp.eq.s32.totalorder %v3106_v10, 0  ;;  %vm214_vm3 = vcmp.eq.s32.totalorder %v3106_v10, 127 }
  0x2c   : > { %v3081_v2 = vld [vmem:[%s202_s7 + $0x8] sm:$0xff]  ;;  %v3083_v3 = vld [vmem:[%s202_s7] sm:$0xff]  ;;  %v3089_v4 = vld [vmem:[%s202_s7 + $0x10] sm:$0xff]  ;;  %s217_s25 = sadd.s32 1, %s3445_s20  ;;  %s2416_s28 = sshll.u32 %s194_s27, 5 }
  0x2d   : > { %250 = vrot.lane.b32.xlu1 %v3081_v2, %s2980_s8  ;;  %221 = vrot.lane.b32.xlu0 %v3083_v3, %s2980_s8  ;;  %v3093_v5 = vld [vmem:[%s202_s7 + $0x18] sm:$0xff]  ;;  %v219_v6 = vld [vmem:[%s3100_s19] sm:$0xff]  ;;  %v308_v12 = vand.u32 4294901760, %v3083_v3  ;;  %v786_v54 = vand.u32 4294901760, %v3081_v2  ;;  %s218_s26 = sld [smem:[#allocation2 + %s217_s25]]  ;;  %s2440_s29 = sadd.s32 2, %s3445_s20 }
  0x2e   : > { %v302_v7 = vsel %vm300_vm1, %v219_v6, 0  ;;  %s3464_s30 = scalar_lea.vmem [#allocation5], %s2416_s28  ;;  %s1263_s4 = sld [smem:[#allocation2 + %s2440_s29]] }
  0x2f   : > { %v3104_v9 = vand.u32 4294901760, %v302_v7  ;;  %v391_v17 = vsub.f32 %v3083_v3, %v308_v12  ;;  %s1264_s5 = sadd.s32 1, %s2440_s29  ;;  %s2442_s7 = sshll.u32 %s3026_s16, 9 }
  0x30   : > { %s1265_s6 = sld [smem:[#allocation2 + %s1264_s5]]  ;;  %s3481_s11 = scalar_lea.hbm %s3532_s3, %s2442_s7 }
  0x31   : > { %252 = vrot.lane.b32.xlu1 %v3081_v2, %s2981_s9  ;;  %223 = vrot.lane.b32.xlu0 %v3083_v3, %s2981_s9  ;;  %v3109_v11 = vsub.f32 %v302_v7, %v3104_v9  ;;  %v392_v28 = vand.u32 4294901760, %v391_v17  ;;  %s3488_s17 = scalar_lea.sflag [#allocation3], %s194_s27  ;;  %s2982_s16 = smov [#allocation5]  }
  0x32   : > { %s2912_s20 = sshll.u32 %s2982_s16, 4  ;;  %s2913_s20 = int_to_ptr.vmem [resolvable:$false] %s2912_s20 }
  0x33   : > { %v3114_v13 = vand.u32 4294901760, %v3109_v11  ;;  %v393_v39 = vsub.f32 %v391_v17, %v392_v28 }
  0x35   : > { %1272 = vrot.lane.b32.xlu1 %v3089_v4, %s2981_s9  ;;  %1270 = vrot.lane.b32.xlu0 %v3089_v4, %s2980_s8  ;;  %v375_v20 = vsub.f32 %v3109_v11, %v3114_v13  ;;  %v394_v50 = vand.u32 4294901760, %v393_v39 }
  0x37   : > { %v3145_v33 = vand.u32 4294901760, %v375_v20 }
  0x39   : > { %1301 = vrot.lane.b32.xlu1 %v3093_v5, %s2981_s9  ;;  %1299 = vrot.lane.b32.xlu0 %v3093_v5, %s2980_s8  ;;  %s2324_s8 = sshll.u32 %s3464_s30, 4  ;;  %s3483_s8 = int_to_ptr.vmem [resolvable:$true] %s2324_s8 }
  0x3a   : > { %p2915_p13 = scmp.lt.s32.totalorder %s3483_s8, %s2913_s20 }
  0x9f   : > { %v251_v14 = vpop.permute.xlu1 %250  ;;  %v222_v15 = vpop.permute.xlu0 %221 }
  0xa0   : > { %v225_v16 = vsel %vm213_vm2, 0.0, %v222_v15  ;;  %v256_v19 = vsel %vm213_vm2, %v3081_v2, %v251_v14  ;;  %v227_v29 = vsel %vm213_vm2, %v3083_v3, %v222_v15  ;;  %v254_v52 = vsel %vm213_vm2, 0.0, %v251_v14 }
  0xa1   : > { %v305_v18 = vand.u32 4294901760, %v225_v16  ;;  %v231_v58 = vadd.f32 %v225_v16, %v3083_v3  ;;  %v783_v62 = vand.u32 4294901760, %v254_v52 }
  0xa3   : > { %v384_v21 = vsub.f32 %v225_v16, %v305_v18  ;;  %v3125_v22 = vpop.permute.xlu1 %252  ;;  %v224_v23 = vpop.permute.xlu0 %223  ;;  %v3127_v24 = vpack.c.bf16 %v308_v12, %v305_v18  ;;  %v3201_v12 = vsub.f32 %v3081_v2, %v786_v54  ;;  %v3209_v15 = vsub.f32 %v254_v52, %v783_v62 }
  0xa4   : > { %v257_v25 = vsel %vm214_vm3, %v3081_v2, %v3125_v22  ;;  %v226_v26 = vsel %vm214_vm3, 0.0, %v224_v23  ;;  %v228_v27 = vsel %vm214_vm3, %v3083_v3, %v224_v23  ;;  %v3225_v23 = vpack.c.bf16 %v786_v54, %v783_v62 }
  0xa5   : > { %v258_v30 = vmax.f32 %v256_v19, %v257_v25  ;;  %2758 = vmatpush3.bf16.msra.mxu0 %v3127_v24  ;;  %v229_v31 = vmax.f32 %v227_v29, %v228_v27  ;;  %v3142_v32 = vand.u32 4294901760, %v226_v26  ;;  %v385_v37 = vand.u32 4294901760, %v384_v21 }
  0xa6   : > { %2544 = vmatprep.subr.mxu0 %v2979_v1  ;;  %v2763_v42 = vpack.c.bf16 %v391_v17, %v384_v21  ;;  %v255_v17 = vsel %vm214_vm3, 0.0, %v3125_v22  ;;  %v863_v22 = vand.u32 4294901760, %v3209_v15  ;;  %v260_v27 = vadd.f32 %v3081_v2, %v254_v52 }
  0xa7   : > { %v1273_v34 = vpop.permute.xlu1 %1272  ;;  %v1271_v35 = vpop.permute.xlu0 %1270  ;;  %v3148_v36 = vmax.f32 %v3081_v2, %v258_v30  ;;  %v398_v40 = vsub.f32 %v226_v26, %v3142_v32  ;;  %v3160_v43 = vmax.f32 %v3083_v3, %v229_v31  ;;  %v386_v47 = vsub.f32 %v384_v21, %v385_v37 }
  0xa8   : > { %v1277_v38 = vsel %vm214_vm3, %v3089_v4, %v1273_v34  ;;  %v1276_v41 = vsel %vm213_vm2, %v3089_v4, %v1271_v35  ;;  %v3188_v59 = vsel %vm213_vm2, 0.0, %v1271_v35  ;;  %v2769_v61 = vpack.c.bf16 %v392_v28, %v385_v37 }
  0xa9   : > { %263 = vadd.xlane.f32.xlu1 %v3148_v36  ;;  %2545 = vmatpush3.msra.mxu0 %v3142_v32  ;;  %v1278_v44 = vmax.f32 %v1276_v41, %v1277_v38  ;;  %v399_v51 = vand.u32 4294901760, %v398_v40  ;;  %v237_v55 = vmul.f32 %v3160_v43, %v3160_v43  ;;  %v387_v57 = vand.u32 4294901760, %v386_v47  ;;  %v2427_v38 = vld [vmem:[%s3100_s19 + $0x8] sm:$0xff]  ;;  %s2908_s19 = scalar_lea.vmem %s3483_s8, 512 }
  0xaa   : > { %2547 = vmatmul.mubr.f32.vlgmr.msra.gmra.mrb[0].mxu0 %v3145_v33  ;;  %2762 = vmatprep.subr.bf16.mxu0 %v2977_v0  ;;  %v232_v3 = vadd.f32 %v231_v58, %v226_v26  ;;  %v1280_v8 = vadd.f32 %v3089_v4, %v3188_v59  ;;  %v3205_v14 = vsel %vm214_vm3, 0.0, %v1273_v34  ;;  %v266_v18 = vmul.f32 %v3148_v36, %v3148_v36  ;;  %p2909_p9 = scmp.ne.s32.totalorder %s3483_s8, %s2908_s19 }
  0xab   : > { %v3164_v45 = vpop.permute.xlu1 %1301  ;;  %v1300_v46 = vpop.permute.xlu0 %1299  ;;  %2764 = vmatpush3.bf16.msra.mxu0 %v2763_v42  ;;  %2564 = vmatprep.mubr.msk.f32.mxu0 %vm2978_vm0, %v2979_v1  ;;  %v3183_v56 = vmax.f32 %v3089_v4, %v1278_v44  ;;  %v2760_v63 = vpack.c.bf16 %v394_v50, %v387_v57  ;;  %v400_v7 = vsub.f32 %v398_v40, %v399_v51  ;;  %v870_v21 = vand.u32 4294901760, %v3201_v12 }
  0xac   : > { %234 = vadd.xlane.f32.xlu0 %v3160_v43  ;;  %v1306_v48 = vsel %vm214_vm3, %v3093_v5, %v3164_v45  ;;  %2562 = vmatprep.subr.mxu0 %v2979_v1  ;;  %v1305_v49 = vsel %vm213_vm2, %v3093_v5, %v1300_v46  ;;  %v3219_v19 = vmul.f32 0.33333334, %v232_v3  ;;  %v1281_v20 = vadd.f32 %v1280_v8, %v3205_v14  ;;  %p2910_p10 = pnand %p2909_p9, %p3043_p5 }
  0xad   : > { %v1307_v53 = vmax.f32 %v1305_v49, %v1306_v48  ;;  %238 = vadd.xlane.f32.xlu1 %v237_v55  ;;  %v1286_v6 = vmul.f32 %v3183_v56, %v3183_v56  ;;  %2761 = vmatpush3.bf16.msra.mxu1 %v2760_v63  ;;  %v401_v16 = vand.u32 4294901760, %v400_v7  ;;  %v3228_v25 = vand.u32 4294901760, %v255_v17 }
  0xae   : > { %2553 = vmatprep.subr.mxu1 %v2979_v1  ;;  %v3232_v26 = vsel %vm213_vm2, 0.0, %v1300_v46  ;;  %v3241_v28 = vmul.f32 0.33333334, %v1281_v20  ;;  %v864_v2 = vsub.f32 %v3209_v15, %v863_v22  ;;  %v3257_v34 = vsel %vm214_vm3, 0.0, %v3164_v45  ;;  %p2911_p12 = pneg %p2910_p10 }
  0xaf   : > { %2563 = vmatpush3.msra.mxu0 %v398_v40  ;;  %v3192_v60 = vmax.f32 %v3093_v5, %v1307_v53  ;;  %v1309_v30 = vadd.f32 %v3093_v5, %v3232_v26  ;;  %v3252_v31 = vsub.f32 %v255_v17, %v3228_v25  ;;  %v871_v35 = vsub.f32 %v3201_v12, %v870_v21 }
  0xb0   : > { %2768 = vmatprep.subr.bf16.mxu0 %v2977_v0  ;;  %1283 = vadd.xlane.f32.xlu0 %v3183_v56  ;;  %v261_v37 = vadd.f32 %v260_v27, %v255_v17  ;;  %v865_v39 = vand.u32 4294901760, %v864_v2  ;;  %v244_v41 = vmul.f32 %v3219_v19, %v3219_v19  ;;  %v1350_v44 = vsel %vm300_vm1, %v2427_v38, 0 }
  0xb1   : > { %2565 = vmatmul.mubr.f32.vlgmr.msra.gmra.mrb[2].mxu0 %v3109_v11  ;;  %1287 = vadd.xlane.f32.xlu1 %v1286_v6  ;;  %v1315_v29 = vmul.f32 %v3192_v60, %v3192_v60  ;;  %v1310_v10 = vadd.f32 %v1309_v30, %v3257_v34  ;;  %v877_v40 = vand.u32 4294901760, %v3252_v31  ;;  %v872_v42 = vand.u32 4294901760, %v871_v35 }
  0xb2   : > { %2770 = vmatpush3.bf16.msra.mxu0 %v2769_v61  ;;  %2582 = vmatprep.mubr.msk.f32.mxu0 %vm2978_vm0, %v2979_v1  ;;  %v2781_v45 = vpack.c.bf16 %v3201_v12, %v3209_v15  ;;  %v3289_v47 = vand.u32 4294901760, %v1350_v44  ;;  %v1356_v49 = vand.u32 4294901760, %v3089_v4  ;;  %v1353_v50 = vand.u32 4294901760, %v3188_v59 }
  0xb3   : > { %2580 = vmatprep.subr.mxu0 %v2979_v1  ;;  %2554 = vmatpush3.msra.mxu1 %v401_v16  ;;  %v3287_v46 = vmul.f32 0.33333334, %v1310_v10  ;;  %v878_v48 = vsub.f32 %v3252_v31, %v877_v40  ;;  %v2787_v54 = vpack.c.bf16 %v870_v21, %v863_v22  ;;  %v1293_v55 = vmul.f32 %v3241_v28, %v3241_v28 }
  0xb4   : > { %1312 = vadd.xlane.f32.xlu0 %v3192_v60  ;;  %2556 = vmatmul.mubr.f32.vlgmr.msra.gmra.mrb[0].mxu1 %v3104_v9  ;;  %v3308_v52 = vsub.f32 %v3089_v4, %v1356_v49  ;;  %v3311_v53 = vsub.f32 %v3188_v59, %v1353_v50  ;;  %v3342_v62 = vpack.c.bf16 %v1356_v49, %v1353_v50  ;;  %v1832_v16 = vand.u32 4294901760, %v3232_v26 }
  0xb5   : > { %2765 = vmatprep.subr.bf16.mxu1 %v2977_v0  ;;  %241 = vadd.xlane.f32.xlu1 %v3219_v19  ;;  %v1322_v57 = vmul.f32 %v3287_v46, %v3287_v46 }
  0xb6   : > { %2581 = vmatpush3.msra.mxu0 %v399_v51  ;;  %2767 = vmatpush3.bf16.msra.mxu1 %v3127_v24  ;;  %v3305_v51 = vsub.f32 %v1350_v44, %v3289_v47  ;;  %v1433_v59 = vand.u32 4294901760, %v3311_v53  ;;  %v1440_v61 = vand.u32 4294901760, %v3308_v52  ;;  %v2799_v17 = vpack.c.bf16 %v3308_v52, %v3311_v53 }
  0xb7   : > { %2571 = vmatprep.subr.mxu1 %v2979_v1  ;;  %2774 = vmatprep.subr.bf16.mxu0 %v2977_v0 }
  0xb8   : > { %267 = vadd.xlane.f32.xlu0 %v266_v18  ;;  %2573 = vmatprep.mubr.msk.f32.mxu1 %vm2978_vm0, %v2979_v1  ;;  %v3330_v58 = vand.u32 4294901760, %v3305_v51  ;;  %v1434_v7 = vsub.f32 %v3311_v53, %v1433_v59  ;;  %v1441_v3 = vsub.f32 %v3308_v52, %v1440_v61 }
  0xb9   : > { %2583 = vmatmul.mubr.f32.vlgmr.msra.gmra.mrb[4].mxu0 %v3104_v9  ;;  %1290 = vadd.xlane.f32.xlu1 %v3241_v28 }
  0xba   : > { %2572 = vmatpush3.msra.mxu1 %v3142_v32  ;;  %2776 = vmatpush3.bf16.msra.mxu0 %v3225_v23  ;;  %v1423_v63 = vsub.f32 %v3305_v51, %v3330_v58  ;;  %v1442_v15 = vand.u32 4294901760, %v1441_v3 }
  0xbb   : > { %2574 = vmatmul.mubr.f32.vlgmr.msra.gmra.mrb[2].mxu1 %v3114_v13  ;;  %2771 = vmatprep.subr.bf16.mxu1 %v2977_v0 }
  0xbc   : > { %1316 = vadd.xlane.f32.xlu0 %v1315_v29  ;;  %2773 = vmatpush3.bf16.msra.mxu1 %v3127_v24  ;;  %v3280_v24 = vmul.f32 0.33333334, %v261_v37  ;;  %v3360_v8 = vand.u32 4294901760, %v1423_v63 }
  0xbd   : > { %2598 = vmatprep.subr.mxu0 %v2979_v1  ;;  %2600 = vmatprep.mubr.msk.f32.mxu0 %vm2978_vm0, %v2979_v1 }
  0xbe   : > { %2599 = vmatpush3.msra.mxu0 %v3228_v25  ;;  %2589 = vmatprep.subr.mxu1 %v2979_v1  ;;  %v273_v4 = vmul.f32 %v3280_v24, %v3280_v24 }
  0xbf   : > { %2601 = vmatmul.mubr.f32.vlgmr.msra.gmra.mrb[6].mxu0 %v3145_v33  ;;  %2780 = vmatprep.subr.bf16.mxu0 %v2977_v0  ;;  %v2778_v33 = vpack.c.bf16 %v872_v42, %v865_v39 }
  0xc0   : > { %245 = vadd.xlane.f32.xlu1 %v244_v41  ;;  %270 = vadd.xlane.f32.xlu0 %v3280_v24 }
  0xc1   : > { %2590 = vmatpush3.msra.mxu1 %v3142_v32  ;;  %2591 = vmatprep.mubr.msk.f32.mxu1 %vm2978_vm0, %v2979_v1  ;;  %v879_v32 = vand.u32 4294901760, %v878_v48 }
  0xc2   : > { %2782 = vmatpush3.bf16.msra.mxu0 %v2781_v45  ;;  %2592 = vmatmul.mubr.f32.vlgmr.msra.gmra.mrb[4].mxu1 %v3104_v9 }
  0xc3   : > { %2777 = vmatprep.subr.bf16.mxu1 %v2977_v0  ;;  %2616 = vmatprep.subr.mxu0 %v2979_v1 }
  0xc4   : > { %2779 = vmatpush3.bf16.msra.mxu1 %v2778_v33  ;;  %1319 = vadd.xlane.f32.xlu0 %v3287_v46 }
  0xc5   : > { %2607 = vmatprep.subr.mxu1 %v2979_v1  ;;  %2618 = vmatprep.mubr.msk.f32.mxu0 %vm2978_vm0, %v2979_v1 }
  0xc6   : > { %2617 = vmatpush3.msra.mxu0 %v3252_v31  ;;  %2609 = vmatprep.mubr.msk.f32.mxu1 %vm2978_vm0, %v2979_v1 }
  0xc7   : > { %2786 = vmatprep.subr.bf16.mxu0 %v2977_v0  ;;  %2619 = vmatmul.mubr.f32.vlgmr.msra.gmra.mrb[8].mxu0 %v3109_v11  ;;  %v3333_v11 = vand.u32 4294901760, %v3205_v14 }
  0xc8   : > { %2608 = vmatpush3.msra.mxu1 %v879_v32  ;;  %2788 = vmatpush3.bf16.msra.mxu0 %v2787_v54 }
  0xc9   : > { %2610 = vmatmul.mubr.f32.vlgmr.msra.gmra.mrb[6].mxu1 %v3104_v9  ;;  %2783 = vmatprep.subr.bf16.mxu1 %v2977_v0  ;;  %v1446_v6 = vsub.f32 %v3205_v14, %v3333_v11  ;;  %v1435_v14 = vand.u32 4294901760, %v1434_v7 }
  0xca   : > { %274 = vadd.xlane.f32.xlu0 %v273_v4  ;;  %2785 = vmatpush3.bf16.msra.mxu1 %v3225_v23 }
  0xcb   : > { %2634 = vmatprep.subr.mxu0 %v2979_v1  ;;  %2625 = vmatprep.subr.mxu1 %v2979_v1  ;;  %v1447_v12 = vand.u32 4294901760, %v1446_v6  ;;  %v2796_v18 = vpack.c.bf16 %v1442_v15, %v1435_v14  ;;  %v284_v15 = vstv %s216_s24  ;;  %s2914_s24 = scalar_lea.vmem %s2913_s20, 1024 }
  0xcc   : > { %2636 = vmatprep.mubr.msk.f32.mxu0 %vm2978_vm0, %v2979_v1  ;;  %2635 = vmatpush3.msra.mxu0 %v877_v40  ;;  %p2916_p0 = scmp.lt.s32.totalorder %s2914_s24, %s2908_s19 }
  0xcd   : > { %1294 = vadd.xlane.f32.xlu1 %v1293_v55  ;;  %2792 = vmatprep.subr.bf16.mxu0 %v2977_v0  ;;  %v1448_v20 = vsub.f32 %v1446_v6, %v1447_v12 }
  0xce   : > { %1323 = vadd.xlane.f32.xlu0 %v1322_v57  ;;  %2626 = vmatpush3.msra.mxu1 %v3228_v25  ;;  %p2917_p1 = por %p2916_p0, %p2915_p13 }
  0xcf   : > { %2627 = vmatprep.mubr.msk.f32.mxu1 %vm2978_vm0, %v2979_v1  ;;  %2637 = vmatmul.mubr.f32.vlgmr.msra.gmra.mrb[10].mxu0 %v3104_v9  ;;  %v1449_v22 = vand.u32 4294901760, %v1448_v20 }
  0xd0   : > { %2628 = vmatmul.mubr.f32.vlgmr.msra.gmra.mrb[8].mxu1 %v3114_v13  ;;  %2794 = vmatpush3.bf16.msra.mxu0 %v3342_v62  ;;  %v1835_v13 = vand.u32 4294901760, %v3093_v5  ;;  %p2918_p2 = pnand %p2917_p1, %p2911_p12 }
  0xd1   : > { %2789 = vmatprep.subr.bf16.mxu1 %v2977_v0  ;;  %2652 = vmatprep.subr.mxu0 %v2979_v1 }
  0xd2   : > { %2791 = vmatpush3.bf16.msra.mxu1 %v3225_v23  ;;  %2654 = vmatprep.mubr.msk.f32.mxu0 %vm2978_vm0, %v2979_v1  ;;  %v1918_v21 = vsub.f32 %v3093_v5, %v1835_v13  ;;  %v1911_v23 = vsub.f32 %v3232_v26, %v1832_v16  ;;  %v3388_v5 = vand.u32 4294901760, %v3257_v34  ;;  %v2811_v27 = vpack.c.bf16 %v1835_v13, %v1832_v16 }
  0xd3   : > { %2643 = vmatprep.subr.mxu1 %v2979_v1  ;;  %2645 = vmatprep.mubr.msk.f32.mxu1 %vm2978_vm0, %v2979_v1 }
  0xd4   : > { %2653 = vmatpush3.msra.mxu0 %v3333_v11  ;;  %v1919_v26 = vand.u32 4294901760, %v1918_v21  ;;  %v1925_v29 = vsub.f32 %v3257_v34, %v3388_v5  ;;  %v2817_v37 = vpack.c.bf16 %v1918_v21, %v1911_v23 }
  0xd5   : > { %2655 = vmatmul.mubr.f32.vlgmr.msra.gmra.mrb[12].mxu0 %v3360_v8  ;;  %2798 = vmatprep.subr.bf16.mxu0 %v2977_v0 }
  0xd6   : > { %2644 = vmatpush3.msra.mxu1 %v3228_v25  ;;  %2800 = vmatpush3.bf16.msra.mxu0 %v2799_v17  ;;  %v1912_v25 = vand.u32 4294901760, %v1911_v23  ;;  %v1920_v2 = vsub.f32 %v1918_v21, %v1919_v26  ;;  %v1926_v31 = vand.u32 4294901760, %v1925_v29 }
  0xd7   : > { %2646 = vmatmul.mubr.f32.vlgmr.msra.gmra.mrb[10].mxu1 %v3104_v9  ;;  %2795 = vmatprep.subr.bf16.mxu1 %v2977_v0  ;;  %v2805_v9 = vpack.c.bf16 %v1440_v61, %v1433_v59 }
  0xd8   : > { %2797 = vmatpush3.bf16.msra.mxu1 %v2796_v18  ;;  %2670 = vmatprep.subr.mxu0 %v2979_v1  ;;  %v1913_v30 = vsub.f32 %v1911_v23, %v1912_v25  ;;  %v1921_v34 = vand.u32 4294901760, %v1920_v2  ;;  %v1927_v10 = vsub.f32 %v1925_v29, %v1926_v31  ;;  %v2823_v40 = vpack.c.bf16 %v1919_v26, %v1912_v25 }
  0xd9   : > { %2661 = vmatprep.subr.mxu1 %v2979_v1  ;;  %2672 = vmatprep.mubr.msk.f32.mxu0 %vm2978_vm0, %v2979_v1 }
  0xda   : > { %2671 = vmatpush3.msra.mxu0 %v1446_v6  ;;  %2663 = vmatprep.mubr.msk.f32.mxu1 %vm2978_vm0, %v2979_v1  ;;  %v1914_v35 = vand.u32 4294901760, %v1913_v30  ;;  %v1928_v39 = vand.u32 4294901760, %v1927_v10 }
  0xdb   : > { %2804 = vmatprep.subr.bf16.mxu0 %v2977_v0  ;;  %2673 = vmatmul.mubr.f32.vlgmr.msra.gmra.mrb[14].mxu0 %v3305_v51 }
  0xdc   : > { %2662 = vmatpush3.msra.mxu1 %v1449_v22  ;;  %2806 = vmatpush3.bf16.msra.mxu0 %v2805_v9  ;;  %v2814_v38 = vpack.c.bf16 %v1921_v34, %v1914_v35 }
  0xdd   : > { %2664 = vmatmul.mubr.f32.vlgmr.msra.gmra.mrb[12].mxu1 %v3289_v47  ;;  %2801 = vmatprep.subr.bf16.mxu1 %v2977_v0 }
  0xde   : > { %2803 = vmatpush3.bf16.msra.mxu1 %v3342_v62  ;;  %2688 = vmatprep.subr.mxu0 %v2979_v1 }
  0xdf   : > { %2679 = vmatprep.subr.mxu1 %v2979_v1  ;;  %2690 = vmatprep.mubr.msk.f32.mxu0 %vm2978_vm0, %v2979_v1 }
  0xe0   : > { %2689 = vmatpush3.msra.mxu0 %v1447_v12  ;;  %2681 = vmatprep.mubr.msk.f32.mxu1 %vm2978_vm0, %v2979_v1 }
  0xe1   : > { %2810 = vmatprep.subr.bf16.mxu0 %v2977_v0  ;;  %2691 = vmatmul.mubr.f32.vlgmr.msra.gmra.mrb[16].mxu0 %v3289_v47 }
  0xe2   : > { %2680 = vmatpush3.msra.mxu1 %v3333_v11  ;;  %2812 = vmatpush3.bf16.msra.mxu0 %v2811_v27 }
  0xe3   : > { %2682 = vmatmul.mubr.f32.vlgmr.msra.gmra.mrb[14].mxu1 %v3330_v58  ;;  %2807 = vmatprep.subr.bf16.mxu1 %v2977_v0 }
  0xe4   : > { %2809 = vmatpush3.bf16.msra.mxu1 %v3342_v62  ;;  %2706 = vmatprep.subr.mxu0 %v2979_v1 }
  0xe5   : > { %2708 = vmatprep.mubr.msk.f32.mxu0 %vm2978_vm0, %v2979_v1  ;;  %2697 = vmatprep.subr.mxu1 %v2979_v1 }
  0xe6   : > { %2707 = vmatpush3.msra.mxu0 %v3388_v5  ;;  %2699 = vmatprep.mubr.msk.f32.mxu1 %vm2978_vm0, %v2979_v1 }
  0xe7   : > { %2709 = vmatmul.mubr.f32.vlgmr.msra.gmra.mrb[18].mxu0 %v3360_v8  ;;  %2816 = vmatprep.subr.bf16.mxu0 %v2977_v0 }
  0xe8   : > { %2698 = vmatpush3.msra.mxu1 %v3333_v11  ;;  %2818 = vmatpush3.bf16.msra.mxu0 %v2817_v37 }
  0xe9   : > { %2700 = vmatmul.mubr.f32.vlgmr.msra.gmra.mrb[16].mxu1 %v3289_v47  ;;  %2813 = vmatprep.subr.bf16.mxu1 %v2977_v0 }
  0xea   : > { %2815 = vmatpush3.bf16.msra.mxu1 %v2814_v38  ;;  %2724 = vmatprep.subr.mxu0 %v2979_v1 }
  0xeb   : > { %2715 = vmatprep.subr.mxu1 %v2979_v1  ;;  %2726 = vmatprep.mubr.msk.f32.mxu0 %vm2978_vm0, %v2979_v1 }
  0xec   : > { %2725 = vmatpush3.msra.mxu0 %v1925_v29  ;;  %2717 = vmatprep.mubr.msk.f32.mxu1 %vm2978_vm0, %v2979_v1 }
  0xed   : > { %2822 = vmatprep.subr.bf16.mxu0 %v2977_v0  ;;  %2727 = vmatmul.mubr.f32.vlgmr.msra.gmra.mrb[20].mxu0 %v3305_v51 }
  0xee   : > { %2716 = vmatpush3.msra.mxu1 %v1928_v39  ;;  %2824 = vmatpush3.bf16.msra.mxu0 %v2823_v40 }
  0xef   : > { %2718 = vmatmul.mubr.f32.vlgmr.msra.gmra.mrb[18].mxu1 %v3289_v47  ;;  %2819 = vmatprep.subr.bf16.mxu1 %v2977_v0 }
  0xf0   : > { %2821 = vmatpush3.bf16.msra.mxu1 %v2811_v27  ;;  %2742 = vmatprep.subr.mxu0 %v2979_v1 }
  0xf1   : > { %2733 = vmatprep.subr.mxu1 %v2979_v1  ;;  %2735 = vmatprep.mubr.msk.f32.mxu1 %vm2978_vm0, %v2979_v1 }
  0xf2   : > { %2743 = vmatpush3.msra.mxu0 %v1926_v31  ;;  %2744 = vmatprep.mubr.msk.f32.mxu0 %vm2978_vm0, %v2979_v1 }
  0xf3   : > { %2745 = vmatmul.mubr.f32.vlgmr.msra.gmra.mrb[22].mxu0 %v3289_v47 }
  0xf4   : > { %2734 = vmatpush3.msra.mxu1 %v3388_v5 }
  0xf5   : > { %2736 = vmatmul.mubr.f32.vlgmr.msra.gmra.mrb[20].mxu1 %v3330_v58  ;;  %2825 = vmatprep.subr.bf16.mxu1 %v2977_v0 }
  0xf6   : > { %2827 = vmatpush3.bf16.msra.mxu1 %v2811_v27  ;;  %2753 = vmatprep.mubr.msk.f32.mxu1 %vm2978_vm0, %v2979_v1 }
  0xf7   : > { %2751 = vmatprep.subr.mxu1 %v2979_v1 }
  0xfa   : > { %2752 = vmatpush3.msra.mxu1 %v3388_v5 }
  0xfb   : > { %2754 = vmatmul.mubr.f32.vlgmr.msra.gmra.mrb[22].mxu1 %v3289_v47 }
 0x136   : > { %v264_v45 = vpop.xlane.xlu1 %263 }
 0x139   : > { %v235_v41 = vpop.xlane.xlu0 %234 }
 0x13a   : > { %v239_v48 = vpop.xlane.xlu1 %238  ;;  %v265_v49 = vadd.f32 %v264_v45, %v235_v41  ;;  %v295_v41 = vstv %s218_s26 }
 0x13c   : > { %v277_v51 = vmul.f32 0.00390625, %v265_v49 }
 0x13d   : > { %v1284_v42 = vpop.xlane.xlu0 %1283 }
 0x13e   : > { %v1288_v32 = vpop.xlane.xlu1 %1287  ;;  %v279_v54 = vmul.f32 %v277_v51, %v277_v51  ;;  %v286_v45 = vsub.f32 0.0, %v277_v51 }
 0x141   : > { %v1313_v44 = vpop.xlane.xlu0 %1312 }
 0x142   : > { %v242_v1 = vpop.xlane.xlu1 %241  ;;  %v1314_v20 = vadd.f32 %v1313_v44, %v1284_v42 }
 0x144   : > { %v3450_v9 = vmul.f32 0.00390625, %v1314_v20 }
 0x145   : > { %v268_v33 = vpop.xlane.xlu0 %267 }
 0x146   : > { %v269_v0 = vadd.f32 %v268_v33, %v239_v48  ;;  %v1291_v47 = vpop.xlane.xlu1 %1290  ;;  %v1328_v30 = vmul.f32 %v3450_v9, %v3450_v9 }
 0x148   : > { %v278_v52 = vmul.f32 0.00390625, %v269_v0 }
 0x149   : > { %v1317_v50 = vpop.xlane.xlu0 %1316 }
 0x14a   : > { %v280_v4 = vsub.f32 %v278_v52, %v279_v54  ;;  %v1318_v5 = vadd.f32 %v1317_v50, %v1288_v32 }
 0x14c   : > { %v281_v57 = vmax.f32 %v280_v4, 0.0  ;;  %v1327_v2 = vmul.f32 0.00390625, %v1318_v5 }
 0x14d   : > { %v271_v53 = vpop.xlane.xlu0 %270  ;;  %v246_v61 = vpop.xlane.xlu1 %245 }
 0x14e   : > { %v282_v58 = vadd.f32 1e-05, %v281_v57  ;;  %v272_v59 = vadd.f32 %v271_v53, %v242_v1  ;;  %v1329_v38 = vsub.f32 %v1327_v2, %v1328_v30 }
 0x150   : > { %2885 = vrsqrt.f32 %v282_v58  ;;  %v288_v63 = vmul.f32 0.00390625, %v272_v59  ;;  %v1330_v44 = vmax.f32 %v1329_v38, 0.0 }
 0x151   : > { %v1320_v55 = vpop.xlane.xlu0 %1319 }
 0x152   : > { %v290_v7 = vmul.f32 %v288_v63, %v288_v63  ;;  %v1321_v48 = vadd.f32 %v1320_v55, %v1291_v47  ;;  %v1331_v52 = vadd.f32 1e-05, %v1330_v44  ;;  %v297_v1 = vsub.f32 0.0, %v288_v63 }
 0x154   : > { %v3459_v51 = vmul.f32 0.00390625, %v1321_v48 }
 0x157   : > { %v275_v11 = vpop.xlane.xlu0 %274 }
 0x158   : > { %v276_v62 = vadd.f32 %v275_v11, %v246_v61 }
 0x15a   : > { %v289_v6 = vmul.f32 0.00390625, %v276_v62  ;;  %v2886_v14 = vpop.eup %2885  ;;  %v1295_v53 = vpop.xlane.xlu1 %1294 }
 0x15b   : > { %v285_v16 = vmul.f32 %v2886_v14, %v284_v15  ;;  %v1324_v54 = vpop.xlane.xlu0 %1323 }
 0x15c   : > { %v291_v12 = vsub.f32 %v289_v6, %v290_v7  ;;  %v1325_v55 = vadd.f32 %v1324_v54, %v1295_v53 }
 0x15d   : > { %v299_v23 = vmul.f32 %v285_v16, %v3160_v43  ;;  %v287_v50 = vmul.f32 %v286_v45, %v285_v16  ;;  %v781_v4 = vmul.f32 %v285_v16, %v3148_v36  ;;  %v1339_v36 = vmul.f32 %v3459_v51, %v3459_v51 }
 0x15e   : > { %v292_v13 = vmax.f32 %v291_v12, 0.0 }
 0x160   : > { %v293_v21 = vadd.f32 1e-05, %v292_v13 }
 0x162   : > { %2887 = vrsqrt.f32 %v293_v21 }
 0x163   : > { %2889 = vrsqrt.f32 %v1331_v52 }
 0x16c   : > { %v2888_v39 = vpop.eup %2887 }
 0x16d   : > { %v296_v33 = vmul.f32 %v2888_v39, %v295_v41  ;;  %v2890_v20 = vpop.eup %2889 }
 0x16f   : > { %v777_v58 = vmul.f32 %v296_v33, %v3219_v19  ;;  %v298_v11 = vmul.f32 %v297_v1, %v296_v33 }
 0x17d   : > { %v378_v3 = vpop.f32.mrb[0].mxu0 }
 0x17e   : > { %v2548_v8 = vpop.f32.mrb[1].mxu0  ;;  %v379_v22 = vadd.f32 %v378_v3, %v299_v23  ;;  %v1333_v23 = vstv %s1263_s4 }
 0x17f   : > { %v1338_v8 = vmul.f32 0.00390625, %v1325_v55  ;;  %v1334_v5 = vmul.f32 %v2890_v20, %v1333_v23 }
 0x181   : > { %v1340_v12 = vsub.f32 %v1338_v8, %v1339_v36  ;;  %v1348_v2 = vmul.f32 %v1334_v5, %v3183_v56  ;;  %v1830_v55 = vmul.f32 %v1334_v5, %v3192_v60 }
 0x183   : > { %v1341_v21 = vmax.f32 %v1340_v12, 0.0 }
 0x184   : > { %v542_v17 = vpop.f32.mrb[2].mxu0 }
 0x185   : > { %v2566_v18 = vpop.f32.mrb[3].mxu0 }
 0x187   : > { %v464_v25 = vpop.f32.mrb[0].mxu1 }
 0x188   : > { %v465_v26 = vadd.f32 %v464_v25, %v379_v22  ;;  %v2557_v27 = vpop.f32.mrb[1].mxu1 }
 0x18a   : > { %v543_v29 = vadd.f32 %v542_v17, %v465_v26  ;;  %v1342_v26 = vadd.f32 1e-05, %v1341_v21 }
 0x18c   : > { %v698_v31 = vpop.f32.mrb[4].mxu0  ;;  %2891 = vrsqrt.f32 %v1342_v26 }
 0x18d   : > { %v2584_v35 = vpop.f32.mrb[5].mxu0 }
 0x18e   : > { %v618_v34 = vpop.f32.mrb[2].mxu1  ;;  %v1255_v35 = vmul.f32 %v296_v33, %v3280_v24  ;;  %v1335_v24 = vsub.f32 0.0, %v3450_v9 }
 0x18f   : > { %v619_v43 = vadd.f32 %v618_v34, %v543_v29  ;;  %v2575_v37 = vpop.f32.mrb[3].mxu1 }
 0x190   : > { %v1336_v1 = vmul.f32 %v1335_v24, %v1334_v5 }
 0x191   : > { %v699_v10 = vadd.f32 %v698_v31, %v619_v43 }
 0x192   : > { %v856_v40 = vpop.f32.mrb[6].mxu0 }
 0x193   : > { %v2602_v42 = vpop.f32.mrb[7].mxu0  ;;  %v857_v47 = vadd.f32 %v856_v40, %v781_v4 }
 0x195   : > { %v772_v49 = vpop.f32.mrb[4].mxu1 }
 0x196   : > { %v773_v0 = vadd.f32 %v772_v49, %v699_v10  ;;  %v2593_v32 = vpop.f32.mrb[5].mxu1 }
 0x198   : > { %v776_v57 = vadd.f32 %v773_v0, %v287_v50  ;;  %v1344_v0 = vstv %s1265_s6 }
 0x19a   : > { %v778_v59 = vadd.f32 %v777_v58, %v776_v57  ;;  %v1020_v61 = vpop.f32.mrb[8].mxu0  ;;  %v1346_v58 = vsub.f32 0.0, %v3459_v51 }
 0x19b   : > { %v2620_v6 = vpop.f32.mrb[9].mxu0 }
 0x19c   : > { %v942_v62 = vpop.f32.mrb[6].mxu1  ;;  %v779_v7 = vadd.f32 %v778_v59, %v298_v11 }
 0x19d   : > { %v943_v63 = vadd.f32 %v942_v62, %v857_v47  ;;  %v2611_v3 = vpop.f32.mrb[7].mxu1 }
 0x19e   : > { %780 = vst [vmem:[%s3464_s30] sm:$0xff] %v779_v7 }
 0x19f   : > { %v1021_v19 = vadd.f32 %v1020_v61, %v943_v63 }
 0x1a2   : > { %v1176_v15 = vpop.f32.mrb[10].mxu0 }
 0x1a3   : > { %v1096_v14 = vpop.f32.mrb[8].mxu1  ;;  %v2638_v17 = vpop.f32.mrb[11].mxu0 }
 0x1a4   : > { %v1097_v13 = vadd.f32 %v1096_v14, %v1021_v19  ;;  %v2629_v16 = vpop.f32.mrb[9].mxu1 }
 0x1a6   : > { %v1177_v18 = vadd.f32 %v1176_v15, %v1097_v13 }
 0x1a8   : > { %v1426_v22 = vpop.f32.mrb[12].mxu0 }
 0x1a9   : > { %v2656_v25 = vpop.f32.mrb[13].mxu0  ;;  %v1427_v43 = vadd.f32 %v1426_v22, %v1348_v2 }
 0x1aa   : > { %v1250_v27 = vpop.f32.mrb[10].mxu1 }
 0x1ab   : > { %v1251_v29 = vadd.f32 %v1250_v27, %v1177_v18  ;;  %v2647_v30 = vpop.f32.mrb[11].mxu1 }
 0x1ad   : > { %v1254_v31 = vadd.f32 %v1251_v29, %v287_v50  ;;  %v2892_v50 = vpop.eup %2891 }
 0x1ae   : > { %v1590_v34 = vpop.f32.mrb[14].mxu0  ;;  %v1345_v52 = vmul.f32 %v2892_v50, %v1344_v0 }
 0x1af   : > { %v1256_v37 = vadd.f32 %v1255_v35, %v1254_v31  ;;  %v2674_v38 = vpop.f32.mrb[15].mxu0 }
 0x1b0   : > { %v1512_v10 = vpop.f32.mrb[12].mxu1  ;;  %v1347_v62 = vmul.f32 %v1346_v58, %v1345_v52  ;;  %v2304_v18 = vmul.f32 %v1345_v52, %v3287_v46 }
 0x1b1   : > { %v1257_v39 = vadd.f32 %v1256_v37, %v298_v11  ;;  %v1513_v40 = vadd.f32 %v1512_v10, %v1427_v43  ;;  %v2665_v41 = vpop.f32.mrb[13].mxu1  ;;  %v1825_v11 = vmul.f32 %v1345_v52, %v3241_v28 }
 0x1b3   : > { %2424 = vst [vmem:[%s3464_s30 + $0x8] sm:$0xff] %v1257_v39  ;;  %v1591_v42 = vadd.f32 %v1590_v34, %v1513_v40 }
 0x1b4   : > { %v1746_v44 = vpop.f32.mrb[16].mxu0 }
 0x1b5   : > { %v2692_v45 = vpop.f32.mrb[17].mxu0 }
 0x1b6   : > { %v1666_v48 = vpop.f32.mrb[14].mxu1 }
 0x1b7   : > { %v1667_v49 = vadd.f32 %v1666_v48, %v1591_v42  ;;  %v2683_v56 = vpop.f32.mrb[15].mxu1 }
 0x1b9   : > { %v1747_v33 = vadd.f32 %v1746_v44, %v1667_v49 }
 0x1ba   : > { %v1905_v32 = vpop.f32.mrb[18].mxu0 }
 0x1bb   : > { %v2710_v53 = vpop.f32.mrb[19].mxu0  ;;  %v1906_v61 = vadd.f32 %v1905_v32, %v1830_v55 }
 0x1bc   : > { %v1820_v54 = vpop.f32.mrb[16].mxu1 }
 0x1bd   : > { %v1821_v4 = vadd.f32 %v1820_v54, %v1747_v33  ;;  %v2701_v57 = vpop.f32.mrb[17].mxu1 }
 0x1bf   : > { %v1824_v47 = vadd.f32 %v1821_v4, %v1336_v1 }
 0x1c0   : > { %v2069_v59 = vpop.f32.mrb[20].mxu0 }
 0x1c1   : > { %v1826_v9 = vadd.f32 %v1825_v11, %v1824_v47  ;;  %v2728_v6 = vpop.f32.mrb[21].mxu0 }
 0x1c2   : > { %v1991_v7 = vpop.f32.mrb[18].mxu1 }
 0x1c3   : > { %v1827_v63 = vadd.f32 %v1826_v9, %v1347_v62  ;;  %v1992_v3 = vadd.f32 %v1991_v7, %v1906_v61  ;;  %v2719_v36 = vpop.f32.mrb[19].mxu1 }
 0x1c5   : > { %2430 = vst [vmem:[%s3464_s30 + $0x10] sm:$0xff] %v1827_v63  ;;  %v2070_v8 = vadd.f32 %v2069_v59, %v1992_v3 }
 0x1c6   : > { %v2225_v19 = vpop.f32.mrb[22].mxu0 }
 0x1c7   : > { %v2746_v51 = vpop.f32.mrb[23].mxu0 }
 0x1c8   : > { %v2145_v60 = vpop.f32.mrb[20].mxu1 }
 0x1c9   : > { %v2146_v12 = vadd.f32 %v2145_v60, %v2070_v8  ;;  %v2737_v28 = vpop.f32.mrb[21].mxu1 }
 0x1cb   : > { %v2226_v14 = vadd.f32 %v2225_v19, %v2146_v12 }
 0x1ce   : > { %v2299_v15 = vpop.f32.mrb[22].mxu1 }
 0x1cf   : > { %v2300_v13 = vadd.f32 %v2299_v15, %v2226_v14  ;;  %v2755_v16 = vpop.f32.mrb[23].mxu1 }
 0x1d1   : > { %v2303_v17 = vadd.f32 %v2300_v13, %v1336_v1 }
 0x1d3   : > { %v2305_v20 = vadd.f32 %v2304_v18, %v2303_v17 }
 0x1d5   : > { %v2306_v21 = vadd.f32 %v2305_v20, %v1347_v62 }
 0x1d7   : > { %2431 = vst [vmem:[%s3464_s30 + $0x18] sm:$0xff] %v2306_v21 }
 0x1d8   : > { %2921 = shalt.err (!%p2918_p2)
}
 0x1d9   : > { %s2922_s25 = scalar_lea.hbm %s3481_s11, 512  ;;  %s2926_s28 = scalar_lea.hbm %s3532_s3, 1024 }
 0x1da   : > { %p2923_p3 = scmp.ne.s32.totalorder %s3481_s11, %s2922_s25  ;;  %p2927_p8 = scmp.lt.u32.totalorder %s3481_s11, %s3532_s3 }
 0x1db   : > { %p2928_p11 = scmp.lt.u32.totalorder %s2926_s28, %s2922_s25  ;;  %p2930_p10 = scmp.lt.u32.totalorder %s2922_s25, %s3481_s11 }
 0x1dc   : > { %p2924_p4 = pnand %p2923_p3, %p3043_p5 }
 0x1dd   : > { %p2929_p9 = por %p2928_p11, %p2927_p8 }
 0x1de   : > { %p2925_p7 = pneg %p2924_p4 }
 0x1df   : > { %p2931_p12 = por %p2930_p10, %p2929_p9 }
 0x1e1   : > { %p2932_p13 = pnand %p2931_p12, %p2925_p7 }
 0x1e3   : > { %2935 = shalt.err (!%p2932_p13)
}
 0x1e4   : > { %s2983_s4 = smov 128   ;;  %s2984_s5 = smov 8  }
 0x1e5   : > { %2832 = dma.vmem_to_hbm [thread:$0]  (%p3043_p5), %s3483_s8, 512, %s3481_s11, %s3488_s17, %s2983_s4, %s2983_s4, %s2984_s5  }
 0x1e6 PF: > { %p2844_p0 = scmp.ge.s32.totalorder %s2974_s15, 2  ;;  %s2339_s6 = sand.u32 1, %s2962_s12  }
 0x1e7   : > { %s2340_s7 = scalar_lea.sflag [#allocation3], %s2339_s6 }
 0x1e8   : > { %p2839_p1 = pnand %p2844_p0, %p3047_p6 }
 0x1ea   : > { %2957 = dma.done.wait (!%p2839_p1), %s2340_s7, 512  }
 0x1eb   : > { %2959 = vsyncadd (!%p2839_p1), %s2340_s7, 4294966784  ;;  %p14_p2 = scmp.ge.s32.totalorder %s3030_s18, 4   ;;  %s3536_s12 = smov %s2966_s13 }
 0x1ec   : > { %s3537_s13 = smov %s2970_s14  ;;  %s3538_s14 = smov %s3041_s21 }
 0x1ed   : > { %s3539_s15 = smov %s3030_s18  ;;  %16 = sbr.rel (!%p14_p2) target bundleno = 4 (0x4), region = 82 }
 0x1f4   :  { %2345 = vsyncpa [#allocation3], 1 }
 0x1f5   :  { %2347 = vsyncpa [#allocation3 + $0x1], 1 }
 0x1f6   :  { %2348 = vsyncpa [#allocation4], 1 }
 0x1f7   :  { %2350 = vsyncpa [#allocation4 + $0x1], 1 }

</bundles_post_ra>
